<compile_context>
chip_gen: v7x
topology: tpu7x:2x2x1
jax: 0.10.0
libtpu: 0.0.40
codegen_flags: <defaults>
</compile_context>

<pallas_src>
import functools

import jax
import jax.numpy as jnp
from jax.experimental import pallas as pl
from jax.experimental.pallas import tpu as pltpu


_ROW_TILE_TARGET = 256            # good MXU row tile on v6e/v7x
_COL_TILE_TARGET = 512
# 48 MiB is safe on v7x (64 MiB physical) and leaves headroom on v5e/v6e
# (128 MiB physical).
_VMEM_LIMIT = 48 * 1024 * 1024


# ----------------------------------------------------------------------------
# helpers
# ----------------------------------------------------------------------------
def _round_up(x, m):
    return ((x + m - 1) // m) * m


def _pick_row_tile(M):
    return min(_ROW_TILE_TARGET, max(8, _round_up(M, 8)))


def _pick_reduce_tile(N):
    # Reduction (hidden) axis: the tile must divide N exactly — ragged
    # reduction blocks would accumulate garbage into the f32 accumulator.
    if N <= _COL_TILE_TARGET:
        return N
    for t in (512, 384, 256, 128):
        if N % t == 0:
            return t
    return N  # TODO(synk): pad awkward hidden dims instead of one huge block.


def _mosaic_params(sem):
    return pltpu.CompilerParams(dimension_semantics=sem,
                                vmem_limit_bytes=_VMEM_LIMIT)


def _layernorm(x, g, b, eps):
    mean = jnp.mean(x, axis=-1, keepdims=True)
    var = jnp.mean((x - mean) ** 2, axis=-1, keepdims=True)
    return (x - mean) * jax.lax.rsqrt(var + eps) * g + b


# ----------------------------------------------------------------------------
# kernels
# ----------------------------------------------------------------------------
def _embed_pe_kernel(x_ref, w_ref, b_ref, pe_ref, o_ref):
    acc = jnp.dot(x_ref[...].astype(jnp.bfloat16), w_ref[...],
                  preferred_element_type=jnp.float32)
    o_ref[...] = (acc + b_ref[...] + pe_ref[...]).astype(o_ref.dtype)


def pallas_embed_pe(trg, w, b, pe):
    """(trg @ w + b) + positional encoding, fused.  trg: (B, S, F) -> (B, S, D)."""
    B, S, F = trg.shape
    D = w.shape[1]
    return pl.pallas_call(
        _embed_pe_kernel,
        out_shape=jax.ShapeDtypeStruct((B, S, D), jnp.float32),
        grid=(B,),
        in_specs=[
            pl.BlockSpec((None, S, F), lambda bi: (bi, 0, 0)),
            pl.BlockSpec((F, D), lambda bi: (0, 0)),
            pl.BlockSpec((1, D), lambda bi: (0, 0)),
            pl.BlockSpec((S, D), lambda bi: (0, 0)),
        ],
        out_specs=pl.BlockSpec((None, S, D), lambda bi: (bi, 0, 0)),
        compiler_params=_mosaic_params(("parallel",)),
    )(trg, w, b, pe)


def _ln_qkv_kernel(x_ref, g_ref, b_ref, wq_ref, bq_ref, wk_ref, bk_ref,
                   wv_ref, bv_ref, q_ref, k_ref, v_ref, *, eps):
    xn = _layernorm(x_ref[...], g_ref[...], b_ref[...], eps).astype(jnp.bfloat16)
    q_ref[...] = (jnp.dot(xn, wq_ref[...], preferred_element_type=jnp.float32)
                  + bq_ref[...]).astype(q_ref.dtype)
    k_ref[...] = (jnp.dot(xn, wk_ref[...], preferred_element_type=jnp.float32)
                  + bk_ref[...]).astype(k_ref.dtype)
    v_ref[...] = (jnp.dot(xn, wv_ref[...], preferred_element_type=jnp.float32)
                  + bv_ref[...]).astype(v_ref.dtype)


def pallas_ln_qkv(x, g, b, wq, bq, wk, bk, wv, bv, eps=1e-5):
    """Fused LayerNorm + Q/K/V projections; LN computed once per row tile."""
    M, D = x.shape
    tm = _pick_row_tile(M)
    spec_row = pl.BlockSpec((tm, D), lambda i: (i, 0))
    spec_vec = pl.BlockSpec((1, D), lambda i: (0, 0))
    spec_w = pl.BlockSpec((D, D), lambda i: (0, 0))
    return pl.pallas_call(
        functools.partial(_ln_qkv_kernel, eps=eps),
        out_shape=tuple(jax.ShapeDtypeStruct((M, D), jnp.float32)
                        for _ in range(3)),
        grid=(pl.cdiv(M, tm),),
        in_specs=[spec_row, spec_vec, spec_vec,
                  spec_w, spec_vec, spec_w, spec_vec, spec_w, spec_vec],
        out_specs=(spec_row, spec_row, spec_row),
        compiler_params=_mosaic_params(("parallel",)),
    )(x, g, b, wq, bq, wk, bk, wv, bv)


def _ln_linear_kernel(x_ref, g_ref, b_ref, w_ref, wb_ref, o_ref, *, eps):
    xn = _layernorm(x_ref[...], g_ref[...], b_ref[...], eps).astype(jnp.bfloat16)
    acc = jnp.dot(xn, w_ref[...], preferred_element_type=jnp.float32)
    o_ref[...] = (acc + wb_ref[...]).astype(o_ref.dtype)


def pallas_ln_linear(x, g, b, w, wb, eps=1e-5):
    """Fused LayerNorm + Linear.  x: (M, D) -> (M, N)."""
    M, D = x.shape
    N = w.shape[1]
    tm = _pick_row_tile(M)
    return pl.pallas_call(
        functools.partial(_ln_linear_kernel, eps=eps),
        out_shape=jax.ShapeDtypeStruct((M, N), jnp.float32),
        grid=(pl.cdiv(M, tm),),
        in_specs=[
            pl.BlockSpec((tm, D), lambda i: (i, 0)),
            pl.BlockSpec((1, D), lambda i: (0, 0)),
            pl.BlockSpec((1, D), lambda i: (0, 0)),
            pl.BlockSpec((D, N), lambda i: (0, 0)),
            pl.BlockSpec((1, N), lambda i: (0, 0)),
        ],
        out_specs=pl.BlockSpec((tm, N), lambda i: (i, 0)),
        compiler_params=_mosaic_params(("parallel",)),
    )(x, g, b, w, wb)


def _kv_kernel(x_ref, wk_ref, bk_ref, wv_ref, bv_ref, k_ref, v_ref):
    xb = x_ref[...].astype(jnp.bfloat16)
    k_ref[...] = (jnp.dot(xb, wk_ref[...], preferred_element_type=jnp.float32)
                  + bk_ref[...]).astype(k_ref.dtype)
    v_ref[...] = (jnp.dot(xb, wv_ref[...], preferred_element_type=jnp.float32)
                  + bv_ref[...]).astype(v_ref.dtype)


def pallas_kv(x, wk, bk, wv, bv):
    """Memory K / V projections emitted as two separate lane-dense outputs."""
    M, D = x.shape
    tm = _pick_row_tile(M)
    spec_row = pl.BlockSpec((tm, D), lambda i: (i, 0))
    spec_vec = pl.BlockSpec((1, D), lambda i: (0, 0))
    spec_w = pl.BlockSpec((D, D), lambda i: (0, 0))
    return pl.pallas_call(
        _kv_kernel,
        out_shape=tuple(jax.ShapeDtypeStruct((M, D), jnp.float32)
                        for _ in range(2)),
        grid=(pl.cdiv(M, tm),),
        in_specs=[spec_row, spec_w, spec_vec, spec_w, spec_vec],
        out_specs=(spec_row, spec_row),
        compiler_params=_mosaic_params(("parallel",)),
    )(x, wk, bk, wv, bv)


def _attn_proj_res_kernel(q_ref, k_ref, v_ref, w_ref, b_ref, r_ref, o_ref,
                          *, num_heads, scale):
    # q_ref: (Sq, D), k_ref/v_ref: (Sk, D) lane-dense.  The per-head output is
    # folded straight into the output projection (o_h @ W[h*Dh:(h+1)*Dh, :]),
    # so no narrow stores and no concatenation — one lane-dense (Sq, D) store.
    Sq, D = q_ref.shape
    Dh = D // num_heads
    acc = jnp.zeros((Sq, D), jnp.float32)
    for h in range(num_heads):
        lo = h * Dh
        q = q_ref[:, lo:lo + Dh].astype(jnp.bfloat16)
        k = k_ref[:, lo:lo + Dh].astype(jnp.bfloat16)
        v = v_ref[:, lo:lo + Dh].astype(jnp.bfloat16)
        # contract on the last dims directly — no k.T / XLU transpose.
        s = jax.lax.dot_general(q, k, (((1,), (1,)), ((), ())),
                                preferred_element_type=jnp.float32) * scale
        s = s - jnp.max(s, axis=-1, keepdims=True)
        p = jnp.exp(s)
        p = p * pl.reciprocal(jnp.sum(p, axis=-1, keepdims=True), approx=True)
        o_h = jnp.dot(p.astype(jnp.bfloat16), v,
                      preferred_element_type=jnp.float32)
        acc = acc + jnp.dot(o_h.astype(jnp.bfloat16), w_ref[lo:lo + Dh, :],
                            preferred_element_type=jnp.float32)
    o_ref[...] = (r_ref[...] + acc + b_ref[...]).astype(o_ref.dtype)


def pallas_attn_proj_res(q, k, v, w, b, res, num_heads, scale):
    """softmax(q k^T * scale) v, output projection and residual add, fused.

    q, res: (B, Sq, D); k, v: (B, Sk, D) -> (B, Sq, D)."""
    B, Sq, D = q.shape
    Sk = k.shape[1]
    return pl.pallas_call(
        functools.partial(_attn_proj_res_kernel,
                          num_heads=num_heads, scale=scale),
        out_shape=jax.ShapeDtypeStruct((B, Sq, D), jnp.float32),
        grid=(B,),
        in_specs=[
            pl.BlockSpec((None, Sq, D), lambda bi: (bi, 0, 0)),
            pl.BlockSpec((None, Sk, D), lambda bi: (bi, 0, 0)),
            pl.BlockSpec((None, Sk, D), lambda bi: (bi, 0, 0)),
            pl.BlockSpec((D, D), lambda bi: (0, 0)),
            pl.BlockSpec((1, D), lambda bi: (0, 0)),
            pl.BlockSpec((None, Sq, D), lambda bi: (bi, 0, 0)),
        ],
        out_specs=pl.BlockSpec((None, Sq, D), lambda bi: (bi, 0, 0)),
        compiler_params=_mosaic_params(("parallel",)),
    )(q, k, v, w, b, res)


def _ln_mlp_kernel(x_ref, g_ref, b_ref, w1_ref, b1_ref, w2_ref, b2_ref,
                   o_ref, xn_ref, acc_ref, *, eps):
    j = pl.program_id(1)

    @pl.when(j == 0)
    def _():
        # LayerNorm computed exactly once per row tile; cached in bf16 scratch
        # and reused for every hidden tile.
        xn = _layernorm(x_ref[...], g_ref[...], b_ref[...], eps)
        xn_ref[...] = xn.astype(jnp.bfloat16)
        acc_ref[...] = jnp.zeros_like(acc_ref)

    h = jnp.dot(xn_ref[...], w1_ref[...],
                preferred_element_type=jnp.float32) + b1_ref[...]
    h = jax.nn.gelu(h, approximate=False)          # nn.GELU default = exact erf
    acc_ref[...] += jnp.dot(h.astype(jnp.bfloat16), w2_ref[...],
                            preferred_element_type=jnp.float32)

    @pl.when(j == pl.num_programs(1) - 1)
    def _():
        # residual + fc2 bias fused into the finalize
        o_ref[...] = (x_ref[...] + acc_ref[...] + b2_ref[...]).astype(o_ref.dtype)


def pallas_ln_mlp(x, g, b, w1, b1, w2, b2, eps=1e-5):
    """Fused x + fc2(GELU(fc1(LN(x)))); hidden dim tiled with f32 accumulator."""
    M, D = x.shape
    Hd = w1.shape[1]
    tm = _pick_row_tile(M)
    th = _pick_reduce_tile(Hd)
    return pl.pallas_call(
        functools.partial(_ln_mlp_kernel, eps=eps),
        out_shape=jax.ShapeDtypeStruct((M, D), jnp.float32),
        grid=(pl.cdiv(M, tm), Hd // th),           # reduction (hidden) axis last
        in_specs=[
            pl.BlockSpec((tm, D), lambda i, j: (i, 0)),
            pl.BlockSpec((1, D), lambda i, j: (0, 0)),
            pl.BlockSpec((1, D), lambda i, j: (0, 0)),
            pl.BlockSpec((D, th), lambda i, j: (0, j)),
            pl.BlockSpec((1, th), lambda i, j: (0, j)),
            pl.BlockSpec((th, D), lambda i, j: (j, 0)),
            pl.BlockSpec((1, D), lambda i, j: (0, 0)),
        ],
        out_specs=pl.BlockSpec((tm, D), lambda i, j: (i, 0)),
        scratch_shapes=[pltpu.VMEM((tm, D), jnp.bfloat16),
                        pltpu.VMEM((tm, D), jnp.float32)],
        compiler_params=_mosaic_params(("parallel", "arbitrary")),
    )(x, g, b, w1, b1, w2, b2)


def _layernorm_kernel(x_ref, g_ref, b_ref, o_ref, *, eps):
    o_ref[...] = _layernorm(x_ref[...], g_ref[...], b_ref[...],
                            eps).astype(o_ref.dtype)


def pallas_layernorm(x, gamma, beta, eps=1e-5):
    """x: (M, D) -> (M, D), normalization over last axis (matches nn.LayerNorm)."""
    M, D = x.shape
    tm = _pick_row_tile(M)
    return pl.pallas_call(
        functools.partial(_layernorm_kernel, eps=eps),
        out_shape=jax.ShapeDtypeStruct((M, D), jnp.float32),
        grid=(pl.cdiv(M, tm),),
        in_specs=[
            pl.BlockSpec((tm, D), lambda i: (i, 0)),
            pl.BlockSpec((1, D), lambda i: (0, 0)),
            pl.BlockSpec((1, D), lambda i: (0, 0)),
        ],
        out_specs=pl.BlockSpec((tm, D), lambda i: (i, 0)),
        compiler_params=_mosaic_params(("parallel",)),
    )(x, gamma, beta)


# ----------------------------------------------------------------------------
# Parameter construction (deterministic, synthetic).  Matmul weights are
# pre-cast to bf16 once; biases / LN params are pre-shaped to (1, N).
# ----------------------------------------------------------------------------
def init_params(key, in_features, embed_dim, depth, num_heads, mlp_ratio):
    hidden = int(embed_dim * mlp_ratio)

    def dense(k, fan_in, fan_out):
        w = jax.random.normal(k, (fan_in, fan_out), jnp.float32) * 0.02
        return w.astype(jnp.bfloat16)

    def vec(n):
        return jnp.zeros((1, n), jnp.float32)

    def ones(n):
        return jnp.ones((1, n), jnp.float32)

    keys = jax.random.split(key, 2 + depth)
    params = {
        "emb_w": dense(keys[0], in_features, embed_dim),
        "emb_b": vec(embed_dim),
        "norm_g": ones(embed_dim),
        "norm_b": vec(embed_dim),
        "blocks": [],
    }
    D = embed_dim
    for d in range(depth):
        bk = jax.random.split(keys[2 + d], 8)
        blk = {
            # self-attention (qkv_bias=False -> zero bias)
            "ln1_g": ones(D), "ln1_b": vec(D),
            "q_w": dense(bk[0], D, D), "q_b": vec(D),
            "k_w": dense(bk[1], D, D), "k_b": vec(D),
            "v_w": dense(bk[2], D, D), "v_b": vec(D),
            "sproj_w": dense(bk[3], D, D), "sproj_b": vec(D),
            # cross-attention (q from trg, k/v from memory)
            "ln2_g": ones(D), "ln2_b": vec(D),
            "cq_w": dense(bk[4], D, D), "cq_b": vec(D),
            "ck_w": dense(bk[5], D, D), "ck_b": vec(D),
            "cv_w": dense(bk[6], D, D), "cv_b": vec(D),
            "cproj_w": dense(bk[7], D, D), "cproj_b": vec(D),
            # MLP
            "ln3_g": ones(D), "ln3_b": vec(D),
            "fc1_w": dense(jax.random.fold_in(bk[0], 1), D, hidden),
            "fc1_b": vec(hidden),
            "fc2_w": dense(jax.random.fold_in(bk[1], 2), hidden, D),
            "fc2_b": vec(D),
        }
        params["blocks"].append(blk)
    return params


def sinusoidal_pe(seq_len, d_model):
    pos = jnp.arange(seq_len, dtype=jnp.float32)[:, None]
    i = jnp.arange(0, d_model, 2, dtype=jnp.float32)[None, :]
    angle = pos / jnp.power(10000.0, i / d_model)
    pe = jnp.zeros((seq_len, d_model), jnp.float32)
    pe = pe.at[:, 0::2].set(jnp.sin(angle))
    pe = pe.at[:, 1::2].set(jnp.cos(angle))
    return pe


# ----------------------------------------------------------------------------
# Decoder forward (eval semantics: dropout / drop_path are identity)
# ----------------------------------------------------------------------------
def decoder_forward(params, trg, memory, num_heads):
    B, S, _ = trg.shape
    Bm, Sm, D = memory.shape
    Dh = D // num_heads
    scale = Dh ** -0.5

    # trg_embedding + sinusoidal positional/time embedding, fused
    pe = sinusoidal_pe(S, D)
    x3 = pallas_embed_pe(trg, params["emb_w"], params["emb_b"], pe)  # (B, S, D)
    x = x3.reshape(B * S, D)
    mem2 = memory.reshape(Bm * Sm, D)

    # TODO(synk): exact DecoderBlock source not provided; using the standard
    # pre-norm (self-attn -> cross-attn -> MLP) block; memory_mask / trg_mask
    # are None in this forward, so no mask is applied in attention.
    for blk in params["blocks"]:
        # ---- self-attention: LN+QKV (3 outputs) -> attn+proj+residual fused
        q, k, v = pallas_ln_qkv(x, blk["ln1_g"], blk["ln1_b"],
                                blk["q_w"], blk["q_b"],
                                blk["k_w"], blk["k_b"],
                                blk["v_w"], blk["v_b"])
        x = pallas_attn_proj_res(q.reshape(B, S, D), k.reshape(B, S, D),
                                 v.reshape(B, S, D),
                                 blk["sproj_w"], blk["sproj_b"],
                                 x.reshape(B, S, D),
                                 num_heads, scale).reshape(B * S, D)

        # ---- cross-attention to memory ----
        q = pallas_ln_linear(x, blk["ln2_g"], blk["ln2_b"],
                             blk["cq_w"], blk["cq_b"])
        km, vm = pallas_kv(mem2, blk["ck_w"], blk["ck_b"],
                           blk["cv_w"], blk["cv_b"])
        x = pallas_attn_proj_res(q.reshape(B, S, D),
                                 km.reshape(Bm, Sm, D), vm.reshape(Bm, Sm, D),
                                 blk["cproj_w"], blk["cproj_b"],
                                 x.reshape(B, S, D),
                                 num_heads, scale).reshape(B * S, D)

        # ---- MLP (fused LN + fc1 + GELU + fc2 + residual) ----
        x = pallas_ln_mlp(x, blk["ln3_g"], blk["ln3_b"],
                          blk["fc1_w"], blk["fc1_b"],
                          blk["fc2_w"], blk["fc2_b"])

    # final norm
    x = pallas_layernorm(x, params["norm_g"], params["norm_b"])
    return x.reshape(B, S, D)


# ----------------------------------------------------------------------------
if __name__ == "__main__":
    B = 2
    S_TRG = 8
    S_MEM = 16
    IN_FEATURES = 16
    EMBED_DIM = 32
    NUM_HEADS = 4
    DEPTH = 2
    MLP_RATIO = 4.0

    key = jax.random.PRNGKey(0)
    k_param, k_trg, k_mem = jax.random.split(key, 3)

    params = init_params(k_param, IN_FEATURES, EMBED_DIM, DEPTH, NUM_HEADS,
                         MLP_RATIO)
    trg = jax.random.normal(k_trg, (B, S_TRG, IN_FEATURES), jnp.float32)
    memory = jax.random.normal(k_mem, (B, S_MEM, EMBED_DIM), jnp.float32)

    out = decoder_forward(params, trg, memory, NUM_HEADS)
    out = jax.block_until_ready(out)

    assert out.shape == (B, S_TRG, EMBED_DIM)
    assert bool(jnp.all(jnp.isfinite(out)))
    print("KERNEL_OK")
</pallas_src>

<mosaic_0001>
module attributes {stable_mosaic.version = 11 : i64} {
  func.func @_embed_pe_kernel(%arg0: i32, %arg1: memref<1x8x16xf32, #tpu.memory_space<vmem>>, %arg2: memref<16x32xbf16, #tpu.memory_space<vmem>>, %arg3: memref<1x32xf32, #tpu.memory_space<vmem>>, %arg4: memref<8x32xf32, #tpu.memory_space<vmem>>, %arg5: memref<1x8x32xf32, #tpu.memory_space<vmem>>) attributes {dimension_semantics = [#tpu.dimension_semantics<parallel>], iteration_bounds = array<i64: 2>, scalar_prefetch = 0 : i64, scratch_operands = 0 : i64, tpu.core_type = #tpu.core_type<tc>, window_params = [{transform_indices = @transform_0, window_bounds = array<i64: 1, 8, 16>}, {pipeline_mode = #tpu.pipeline_mode<synchronous>, transform_indices = @transform_1, window_bounds = array<i64: 16, 32>}, {pipeline_mode = #tpu.pipeline_mode<synchronous>, transform_indices = @transform_2, window_bounds = array<i64: 1, 32>}, {pipeline_mode = #tpu.pipeline_mode<synchronous>, transform_indices = @transform_3, window_bounds = array<i64: 8, 32>}, {transform_indices = @transform_4, window_bounds = array<i64: 1, 8, 32>}]} {
    %c0 = arith.constant 0 : index
    %c0_0 = arith.constant 0 : index
    %c0_1 = arith.constant 0 : index
    %0 = vector.load %arg1[%c0, %c0_0, %c0_1] : memref<1x8x16xf32, #tpu.memory_space<vmem>>, vector<1x8x16xf32>
    %1 = vector.shape_cast %0 : vector<1x8x16xf32> to vector<8x16xf32>
    %2 = arith.truncf %1 : vector<8x16xf32> to vector<8x16xbf16>
    %c0_2 = arith.constant 0 : index
    %c0_3 = arith.constant 0 : index
    %3 = vector.load %arg2[%c0_2, %c0_3] : memref<16x32xbf16, #tpu.memory_space<vmem>>, vector<16x32xbf16>
    %cst = arith.constant dense<0.000000e+00> : vector<8x32xf32>
    %4 = tpu.matmul %2, %3, %cst {dimension_numbers = #tpu.dot_dimension_numbers<[1], [0], [0], [1], [0, 0, 1, 1], [], []>} : vector<8x16xbf16>, vector<16x32xbf16>, vector<8x32xf32> -> vector<8x32xf32>
    %c0_4 = arith.constant 0 : index
    %c0_5 = arith.constant 0 : index
    %5 = vector.load %arg3[%c0_4, %c0_5] : memref<1x32xf32, #tpu.memory_space<vmem>>, vector<1x32xf32>
    %6 = vector.broadcast %5 : vector<1x32xf32> to vector<8x32xf32>
    %7 = arith.addf %4, %6 : vector<8x32xf32>
    %c0_6 = arith.constant 0 : index
    %c0_7 = arith.constant 0 : index
    %8 = vector.load %arg4[%c0_6, %c0_7] : memref<8x32xf32, #tpu.memory_space<vmem>>, vector<8x32xf32>
    %9 = arith.addf %7, %8 : vector<8x32xf32>
    %c0_8 = arith.constant 0 : index
    %c0_9 = arith.constant 0 : index
    %c0_10 = arith.constant 0 : index
    %10 = vector.load %arg5[%c0_8, %c0_9, %c0_10] : memref<1x8x32xf32, #tpu.memory_space<vmem>>, vector<1x8x32xf32>
    %11 = vector.shape_cast %10 : vector<1x8x32xf32> to vector<8x32xf32>
    %12 = vector.shape_cast %9 : vector<8x32xf32> to vector<1x8x32xf32>
    tpu.vector_store %arg5[%c0_8, %c0_9, %c0_10], %12 {strides = array<i32>} : memref<1x8x32xf32, #tpu.memory_space<vmem>>, vector<1x8x32xf32>,
    return
  }
  func.func @transform_0(%arg0: i32) -> (i32, i32, i32) {
    %c0_i32 = arith.constant 0 : i32
    %c0_i32_0 = arith.constant 0 : i32
    %c0_i32_1 = arith.constant 0 : i32
    return %arg0, %c0_i32, %c0_i32_0 : i32, i32, i32
  }
  func.func @transform_1(%arg0: i32) -> (i32, i32) {
    %c0_i32 = arith.constant 0 : i32
    %c0_i32_0 = arith.constant 0 : i32
    %c0_i32_1 = arith.constant 0 : i32
    return %c0_i32, %c0_i32_0 : i32, i32
  }
  func.func @transform_2(%arg0: i32) -> (i32, i32) {
    %c0_i32 = arith.constant 0 : i32
    %c0_i32_0 = arith.constant 0 : i32
    %c0_i32_1 = arith.constant 0 : i32
    return %c0_i32, %c0_i32_0 : i32, i32
  }
  func.func @transform_3(%arg0: i32) -> (i32, i32) {
    %c0_i32 = arith.constant 0 : i32
    %c0_i32_0 = arith.constant 0 : i32
    %c0_i32_1 = arith.constant 0 : i32
    return %c0_i32, %c0_i32_0 : i32, i32
  }
  func.func @transform_4(%arg0: i32) -> (i32, i32, i32) {
    %c0_i32 = arith.constant 0 : i32
    %c0_i32_0 = arith.constant 0 : i32
    %c0_i32_1 = arith.constant 0 : i32
    return %arg0, %c0_i32, %c0_i32_0 : i32, i32, i32
  }
}

</mosaic_0001>

<bundles_post_ra>
// kernel: tpu_custom_call.1
= control target key start
LH: loop header
LB: loop body
LE: loop exit
PB: predicated region body
PF: predicated region fallthrough
CT: control target
= control target key end

     0   :  { %9 = vsyncpa [#allocation3], 0  ;;  %s839_s0 = inlined_call_operand.hbm [shape: f32[2,8,16], index: 0, kind: input, shape index: {}]   ;;  %s840_s1 = inlined_call_operand.hbm [shape: bf16[16,32], index: 1, kind: input, shape index: {}]   ;;  %s841_s2 = inlined_call_operand.vmem [shape: f32[1,32], index: 2, kind: input, shape index: {}]   ;;  %s842_s3 = inlined_call_operand.vmem [shape: f32[8,32], index: 3, kind: input, shape index: {}]   ;;  %s843_s4 = inlined_call_operand.hbm [shape: f32[2,8,32], index: 4, kind: output, shape index: {}]  }
   0x1   :  { %11 = vsyncpa [#allocation3 + $0x1], 0 }
   0x2   :  { %12 = vsyncpa [#allocation6], 0 }
   0x3   :  { %13 = vsyncpa [#allocation4], 0 }
   0x4   :  { %15 = vsyncpa [#allocation4 + $0x1], 0  ;;  %s637_s15 = smov 0   ;;  %s639_s16 = smov 0  }
   0x5   :  { %s641_s17 = smov 0   ;;  %s643_s18 = smov 0  }
   0x6 LB: > { %s658_s19 = sadd.s32 4294967295, %s603_s18   ;;  %s388_s20 = sadd.s32 4294967294, %s603_s18   ;;  %s603_s18 = sphi %s643_s18, %s863_s18   ;;  %s599_s17 = sphi %s641_s17, %s862_s17   ;;  %s595_s16 = sphi %s639_s16, %s861_s16   ;;  %s591_s15 = sphi %s637_s15, %s860_s15  }
   0x7   : > { %p41_p0 = scmp.ne.s32.totalorder %s595_s16, %s591_s15  ;;  %p844_p1 = scmp.eq.s32.totalorder %s658_s19, 0 }
   0x8   : > { %p134_p3 = scmp.eq.s32.totalorder %s388_s20, 1  ;;  %p389_p5 = scmp.ge.s32.totalorder %s603_s18, 1 }
   0x9   : > { %p667_p4 = por %p844_p1, %p41_p0  ;;  %p141_p7 = scmp.lt.s32.totalorder %s603_s18, 3 }
   0xa   : > { %p672_p6 = por %p134_p3, %p41_p0  ;;  %s605_s24 = smov [#allocation5]  }
   0xb   : > { %s847_s21 = scalar_select %p667_p4, 1, 0 }
   0xc   : > { %s848_s22 = scalar_select %p672_p6, 1, 0 }
   0xd   : > { %p677_p8 = pnand %p389_p5, %p141_p7  ;;  %s153_s25 = sshll.u32 %s605_s24, 4  ;;  %s681_s25 = int_to_ptr.vmem [resolvable:$true] %s153_s25 }
   0xe   : > { %s693_s27 = sadd.s32 1, %s603_s18   ;;  %s28_s28 = sadd.s32 1, %s599_s17 }
   0xf   : > { %s849_s23 = scalar_select %p677_p8, 1, 0 }
  0x10   : > { %p421_p9 = pneg %p677_p8  ;;  %s25_s29 = ssub.s32 %s603_s18, %s693_s27 }
  0x11   : > { %s475_s6 = scalar_lea.hbm %s840_s1, 128 }
  0x12   : > { %p688_p11 = pnand %p421_p9, %p844_p1  ;;  %p476_p12 = scmp.ne.s32.totalorder %s840_s1, %s475_s6 }
  0x13   : > { %p482_p5 = scmp.lt.u32.totalorder %s475_s6, %s840_s1 }
  0x14   : > { %p477_p13 = pneg %p688_p11 }
  0x16   : > { %p478_p0 = pnand %p477_p13, %p476_p12 }
  0x18   : > { %p479_p3 = pneg %p478_p0 }
  0x1a   : > { %p484_p7 = pnand %p482_p5, %p479_p3 }
  0x1c   : > { %487 = shalt.err (!%p484_p7)
}
  0x1d   : > { %s488_s11 = scalar_lea.vmem %s681_s25, 128  ;;  %p496_p2 = scmp.lt.s32.totalorder %s681_s25, %s681_s25 }
  0x1e   : > { %p489_p9 = scmp.ne.s32.totalorder %s681_s25, %s488_s11  ;;  %p497_p6 = scmp.lt.s32.totalorder %s488_s11, %s488_s11 }
  0x20   : > { %p491_p10 = pnand %p489_p9, %p477_p13  ;;  %p498_p4 = por %p497_p6, %p496_p2 }
  0x22   : > { %p492_p1 = pneg %p491_p10 }
  0x24   : > { %p499_p8 = pnand %p498_p4, %p492_p1 }
  0x26   : > { %502 = shalt.err (!%p499_p8)
}
  0x27   : > { %s606_s12 = smov 64   ;;  %s607_s13 = smov 4  }
  0x28   : > { %424 = dma.hbm_to_vmem [thread:$0]  (!%p688_p11), %s840_s1, 128, %s681_s25, [#allocation6], %s606_s12, %s606_s12, %s607_s13  }
  0x29   : > { %p26_p2 = scmp.eq.s32.totalorder %s25_s29, 0  ;;  %p35_p1 = scmp.ne.s32.totalorder %s599_s17, %s595_s16 }
  0x2a   : > { %p36_p4 = scmp.eq.s32.totalorder %s603_s18, 0  ;;  %p434_p6 = scmp.lt.s32.totalorder %s603_s18, 2 }
  0x2b   : > { %s724_s24 = scalar_select %p26_p2, %s599_s17, %s28_s28  }
  0x2c   : > { %p37_p8 = por %p36_p4, %p35_p1  ;;  %p851_p10 = scmp.eq.s32.totalorder %s658_s19, 1 }
  0x2d   : > { %s173_s5 = sand.u32 1, %s599_s17   ;;  %s393_s6 = sshll.u32 %s603_s18, 7 }
  0x2e   : > { %p728_p12 = por %p851_p10, %p35_p1  ;;  %s392_s7 = sshll.u32 %s173_s5, 3 }
  0x2f   : > { %s737_s9 = scalar_lea.hbm %s839_s0, %s393_s6  ;;  %s177_s25 = scalar_lea.vmem [#allocation2], %s392_s7 }
  0x30   : > { %s184_s28 = sshll.u32 %s177_s25, 4  ;;  %p739_p11 = pnand %p434_p6, %p37_p8  ;;  %s743_s28 = int_to_ptr.vmem [resolvable:$true] %s184_s28 }
  0x31   : > { %s174_s10 = scalar_lea.sflag [#allocation3], %s173_s5  ;;  %s503_s11 = scalar_lea.hbm %s737_s9, 128 }
  0x32   : > { %p504_p13 = scmp.ne.s32.totalorder %s737_s9, %s503_s11  ;;  %p505_p0 = pneg %p739_p11 }
  0x33   : > { %s508_s14 = scalar_lea.hbm %s839_s0, 256  ;;  %p509_p7 = scmp.lt.u32.totalorder %s737_s9, %s839_s0 }
  0x34   : > { %p506_p3 = pnand %p505_p0, %p504_p13  ;;  %p510_p9 = scmp.lt.u32.totalorder %s508_s14, %s503_s11 }
  0x35   : > { %p512_p1 = scmp.lt.u32.totalorder %s503_s11, %s737_s9 }
  0x36   : > { %p507_p5 = pneg %p506_p3  ;;  %p511_p2 = por %p510_p9, %p509_p7 }
  0x38   : > { %p513_p4 = por %p512_p1, %p511_p2 }
  0x3a   : > { %p514_p6 = pnand %p513_p4, %p507_p5 }
  0x3c   : > { %517 = shalt.err (!%p514_p6)
}
  0x3d   : > { %s518_s5 = scalar_lea.vmem %s743_s28, 128  ;;  %s608_s7 = smov [#allocation2]  }
  0x3e   : > { %p519_p8 = scmp.ne.s32.totalorder %s743_s28, %s518_s5  ;;  %s523_s26 = sshll.u32 %s608_s7, 4  ;;  %s524_s26 = int_to_ptr.vmem [resolvable:$false] %s523_s26 }
  0x3f   : > { %s525_s8 = scalar_lea.vmem %s524_s26, 256  ;;  %p526_p3 = scmp.lt.s32.totalorder %s743_s28, %s524_s26 }
  0x40   : > { %p521_p10 = pnand %p519_p8, %p505_p0  ;;  %p527_p7 = scmp.lt.s32.totalorder %s525_s8, %s518_s5 }
  0x42   : > { %p522_p13 = pneg %p521_p10  ;;  %p528_p9 = por %p527_p7, %p526_p3 }
  0x44   : > { %p529_p2 = pnand %p528_p9, %p522_p13 }
  0x46   : > { %532 = shalt.err (!%p529_p2)
}
  0x47   : > { %428 = dma.hbm_to_vmem [thread:$0]  (!%p739_p11), %s737_s9, 128, %s743_s28, %s174_s10  }
  0x48   : > { %p854_p5 = scmp.ne.s32.totalorder %s849_s23, 0 }
  0x49   : > { %s773_s25 = sand.u32 (!%p854_p5), 1, %s595_s16   ;;  %p855_p0 = scmp.ne.s32.totalorder (!%p854_p5), %s847_s21, 0 }
  0x4a   : > { %193 = sbr.rel (%p854_p5) target bundleno = 320 (0x140), region = 36  ;;  %s395_s11 = sshll.u32 (!%p854_p5), %s773_s25, 3 }
  0x4b   : > { %s196_s12 = scalar_lea.sflag (!%p854_p5), [#allocation3], %s773_s25  ;;  %s199_s13 = scalar_lea.vmem (!%p854_p5), [#allocation2], %s395_s11 }
  0x51   : > { %578 = dma.done.wait (%p855_p0), %s196_s12, 128  }
  0x52   : > { %580 = vsyncadd (%p855_p0), %s196_s12, 4294967168  ;;  %p856_p1 = scmp.eq.s32.totalorder %s658_s19, 0 }
  0x54   : > { %582 = dma.done.wait (%p856_p1), [#allocation6], 128   ;;  %p857_p11 = pmov %p856_p1 }
  0x55   : > { %v609_v0 = vmov 0.0   ;;  %vm610_vm0 = vmmov 0   ;;  %v474_v1 = vld [vmem:[#allocation5] sm:$0xff]   ;;  %v229_v2 = vld [vmem:[%s199_s13] sm:$0xff]  ;;  %vm246_vm1 = vcmask 130048   ;;  %s402_s29 = sshll.u32 %s658_s19, 7 }
  0x56   : > { %584 = vsyncadd (%p857_p11), [#allocation6], 4294967168  ;;  %407 = vmatprep.subr.bf16.mxu0 %v609_v0  ;;  %409 = vmatprep.mubr.msk.bf16.mxu0 %vm610_vm0, %v609_v0  ;;  %v230_v3 = vpack.c.bf16 %v229_v2, %v229_v2  ;;  %v398_v4 = vld [vmem:[%s841_s2] ss:$0 sm:$0xff]  ;;  %s227_s10 = scalar_lea.vmem [#allocation7], %s395_s11  ;;  %vm292_vm2 = vcmask 261120   ;;  %s795_s5 = scalar_lea.hbm %s843_s4, %s402_s29 }
  0x57   : > { %408 = vmatpush3.bf16.msra.mxu0 %v474_v1  ;;  %v290_v6 = vld [vmem:[%s842_s3] sm:$0xff]  ;;  %s308_s14 = sshll.u32 %s227_s10, 4  ;;  %s295_s19 = scalar_lea.sflag [#allocation4], %s773_s25  ;;  %s797_s14 = int_to_ptr.vmem [resolvable:$true] %s308_s14 }
  0x58   : > { %s533_s7 = scalar_lea.vmem %s797_s14, 128  ;;  %s611_s26 = smov [#allocation7]  }
  0x59   : > { %p534_p4 = scmp.ne.s32.totalorder %s797_s14, %s533_s7  ;;  %s537_s8 = sshll.u32 %s611_s26, 4  ;;  %s538_s8 = int_to_ptr.vmem [resolvable:$false] %s537_s8 }
  0x5a   : > { %410 = vmatmul.mubr.msk.bf16.vlgmr.msra.gmra.mrb[0].mxu0 %vm246_vm1, %v230_v3  ;;  %s539_s11 = scalar_lea.vmem %s538_s8, 256  ;;  %p540_p10 = scmp.lt.s32.totalorder %s797_s14, %s538_s8 }
  0x5b   : > { %p535_p6 = pnand %p534_p4, %p728_p12  ;;  %p541_p13 = scmp.lt.s32.totalorder %s539_s11, %s533_s7 }
  0x5d   : > { %p536_p8 = pneg %p535_p6  ;;  %p542_p3 = por %p541_p13, %p540_p10 }
  0x5f   : > { %p543_p7 = pnand %p542_p3, %p536_p8 }
 0x12d   : > { %v284_v5 = vpop.f32.mrb[0].mxu0 }
 0x12e   : > { %v285_v7 = vadd.f32 %v398_v4, %v284_v5  ;;  %v411_v8 = vpop.f32.mrb[1].mxu0 }
 0x12f   : > { %v287_v9 = vpop.f32.mrb[2].mxu0 }
 0x130   : > { %v291_v10 = vadd.f32 %v290_v6, %v285_v7  ;;  %v412_v11 = vpop.f32.mrb[3].mxu0 }
 0x132   : > { %293 = vst.msk [vmem:[%s227_s10] sm:$0xff] %vm292_vm2, %v291_v10 }
 0x133   : > { %546 = shalt.err (!%p543_p7)
}
 0x134   : > { %s547_s25 = scalar_lea.hbm %s795_s5, 128  ;;  %s551_s23 = scalar_lea.hbm %s843_s4, 256 }
 0x135   : > { %p548_p9 = scmp.ne.s32.totalorder %s795_s5, %s547_s25  ;;  %p552_p0 = scmp.lt.u32.totalorder %s795_s5, %s843_s4 }
 0x136   : > { %p553_p1 = scmp.lt.u32.totalorder %s551_s23, %s547_s25  ;;  %p555_p4 = scmp.lt.u32.totalorder %s547_s25, %s795_s5 }
 0x137   : > { %p549_p2 = pnand %p548_p9, %p728_p12 }
 0x138   : > { %p554_p11 = por %p553_p1, %p552_p0 }
 0x139   : > { %p550_p5 = pneg %p549_p2 }
 0x13a   : > { %p556_p6 = por %p555_p4, %p554_p11 }
 0x13c   : > { %p557_p8 = pnand %p556_p6, %p550_p5 }
 0x13e   : > { %560 = shalt.err (!%p557_p8)
}
 0x13f   : > { %419 = dma.vmem_to_hbm [thread:$0]  (%p728_p12), %s797_s14, 128, %s795_s5, %s295_s19  }
 0x140 PF: > { %s320_s28 = sand.u32 1, %s591_s15   ;;  %p858_p10 = scmp.ne.s32.totalorder %s848_s22, 0 }
 0x141   : > { %p859_p13 = scmp.ge.s32.totalorder %s603_s18, 2  ;;  %s321_s29 = scalar_lea.sflag [#allocation4], %s320_s28 }
 0x143   : > { %p430_p3 = pnand %p859_p13, %p858_p10 }
 0x145   : > { %586 = dma.done.wait (!%p430_p3), %s321_s29, 128  }
 0x146   : > { %588 = vsyncadd (!%p430_p3), %s321_s29, 4294967168  ;;  %p18_p7 = scmp.ge.s32.totalorder %s693_s27, 4   ;;  %s860_s15 = smov %s595_s16 }
 0x147   : > { %s861_s16 = smov %s599_s17  ;;  %s862_s17 = smov %s724_s24 }
 0x148   : > { %s863_s18 = smov %s693_s27  ;;  %20 = sbr.rel (!%p18_p7) target bundleno = 6 (0x6), region = 85 }
 0x14f   :  { %326 = vsyncpa [#allocation3], 1 }
 0x150   :  { %328 = vsyncpa [#allocation3 + $0x1], 1 }
 0x151   :  { %329 = vsyncpa [#allocation6], 1 }
 0x152   :  { %330 = vsyncpa [#allocation4], 1 }
 0x153   :  { %332 = vsyncpa [#allocation4 + $0x1], 1 }

</bundles_post_ra>
